<compile_context>
chip_gen: v7x
topology: tpu7x:2x2x1
jax: 0.10.0
libtpu: 0.0.40
codegen_flags: <defaults>
</compile_context>

<pallas_src>
import jax
import jax.numpy as jnp
from jax.experimental import pallas as pl
from jax.experimental.pallas import tpu as pltpu


def _pos_embed_ln_kernel(x_ref, pos_ref, gamma_ref, beta_ref, o_ref):
    # x_ref:     (Bblk, tS, E)  batch-tile x sequence-tile of the input
    # pos_ref:   (tS, E)        position-embedding tile (shared across batch)
    # gamma_ref: (1, E)         layernorm weight
    # beta_ref:  (1, E)         layernorm bias
    x = x_ref[...].astype(jnp.float32)               # (Bblk, tS, E)
    pos = pos_ref[...].astype(jnp.float32)           # (tS, E)

    emb = x + pos[None, :, :]                        # broadcast add over batch dim

    # LayerNorm over the last (embed) axis, eps = 1e-5 (PyTorch default).
    # Single-pass moments: the two reductions are independent (2 XLUs).
    inv_e = 1.0 / emb.shape[-1]
    mean = jnp.sum(emb, axis=-1, keepdims=True) * inv_e
    mean_sq = jnp.sum(emb * emb, axis=-1, keepdims=True) * inv_e
    var = mean_sq - mean * mean
    inv = jax.lax.rsqrt(var + 1e-5)                  # EUP, separate issue slot
    norm = (emb - mean) * inv

    gamma = gamma_ref[...].astype(jnp.float32)[None, :, :]   # (1, 1, E)
    beta = beta_ref[...].astype(jnp.float32)[None, :, :]     # (1, 1, E)
    out = norm * gamma + beta

    # TODO(synk): nn.Dropout(0.1) is identity in eval mode; training-mode
    # stochastic dropout would use pltpu.prng_seed / prng_random_bits here.
    o_ref[...] = out.astype(o_ref.dtype)


def _vmem_capacity_bytes():
    """Per-core VMEM capacity; falls back to the most constrained part (v7x)."""
    try:
        return int(pltpu.get_tpu_info().vmem_capacity_bytes)
    except Exception:
        return 64 * 1024 * 1024


def _pick_tiles(B, S, E, itemsize, vmem_cap):
    """Choose (Bblk, tS) so each (Bblk, tS, E) block stays within a per-block
    byte target derived from this generation's VMEM, with dtype-aware sublane
    alignment.  Only exact divisors are chosen, so the grid never drops rows.
    """
    # ~1/12 of VMEM per block (double-buffered x/out + pos + headroom),
    # capped at 8 MiB: 512+-row f32 tiles already reach ~85% of HBM roofline.
    target_block = min(8 << 20, max(512 * 1024, vmem_cap // 12))
    # Sub-32-bit dtypes pack rows along sublanes: bf16 -> 16, int8/fp8 -> 32.
    align = {4: 8, 2: 16, 1: 32}.get(itemsize, 8)

    # Sequence tile: largest aligned divisor of S whose (tS, E) slab fits.
    row_budget = max(align, target_block // max(1, E * itemsize))
    tS = None
    for d in range(min(S, row_budget), 0, -1):
        if S % d == 0 and d % align == 0:
            tS = d
            break
    if tS is None:
        # Ragged / unaligned S: one full-extent tile (full-dim blocks are
        # exempt from the (8,128) rule).  Correct, possibly large.
        tS = S

    # Batch tile: fold as many batch elements as fit the same budget.
    per_batch = tS * E * itemsize
    bb_budget = max(1, target_block // max(1, per_batch))
    Bblk = 1
    for d in range(min(B, bb_budget), 0, -1):
        if B % d == 0:
            Bblk = d
            break
    return Bblk, tS


def positional_embedding_forward(x, pos_table, gamma, beta, *,
                                 seq_block=None, batch_block=None):
    """x: (B, S, E); pos_table: (S, E); gamma/beta: (E,). dtype f32 or bf16."""
    B, S, E = x.shape
    assert pos_table.shape == (S, E), "pos_table must be (seq_len, embed_size)"
    itemsize = jnp.dtype(x.dtype).itemsize
    vmem_cap = _vmem_capacity_bytes()

    auto_bb, auto_ts = _pick_tiles(B, S, E, itemsize, vmem_cap)
    tS = int(seq_block) if seq_block is not None else auto_ts
    Bblk = int(batch_block) if batch_block is not None else auto_bb
    assert S % tS == 0, f"seq_block={tS} must divide S={S}"
    assert B % Bblk == 0, f"batch_block={Bblk} must divide B={B}"
    num_s = S // tS
    num_b = B // Bblk

    gamma2d = gamma.reshape(1, E)
    beta2d = beta.reshape(1, E)

    # Double-buffered footprint: 2*(x + out) blocks + 2 pos blocks (+ tiny
    # gamma/beta).  Size the scoped-VMEM limit from that, capped at 48 MiB so
    # there is always headroom for Mosaic internal scratch on v7x's 64 MiB.
    footprint = (4 * Bblk + 2) * tS * E * itemsize
    cap = min(48 << 20, max(vmem_cap // 2, vmem_cap - (16 << 20)))
    vmem_limit = int(min(max(2 * footprint + (2 << 20), 16 << 20), cap))
    vmem_limit = int(max(vmem_limit, footprint + (1 << 20)))  # ragged-S fallback

    # Purely HBM-bandwidth-bound: read x + pos + params, write out.
    bytes_accessed = (2 * B * S * E + S * E + 2 * E) * itemsize
    cost = pl.CostEstimate(flops=9 * B * S * E,
                           transcendentals=B * S,
                           bytes_accessed=int(bytes_accessed))

    return pl.pallas_call(
        _pos_embed_ln_kernel,
        out_shape=jax.ShapeDtypeStruct((B, S, E), x.dtype),
        grid_spec=pltpu.PrefetchScalarGridSpec(
            num_scalar_prefetch=0,
            # Batch tiles innermost: the pos-table block (indexed only by the
            # seq-tile axis) is not re-DMAed across consecutive batch steps.
            grid=(num_s, num_b),
            in_specs=[
                pl.BlockSpec((Bblk, tS, E), lambda s, b: (b, s, 0)),  # x tile
                pl.BlockSpec((tS, E), lambda s, b: (s, 0)),           # pos tile
                pl.BlockSpec((1, E), lambda s, b: (0, 0)),            # gamma
                pl.BlockSpec((1, E), lambda s, b: (0, 0)),            # beta
            ],
            out_specs=pl.BlockSpec((Bblk, tS, E), lambda s, b: (b, s, 0)),
        ),
        compiler_params=pltpu.CompilerParams(
            # Every grid point is independent -> both axes parallel
            # (lets v7x shard across its 2 TensorCores; neutral on v5e/v6e).
            dimension_semantics=("parallel", "parallel"),
            vmem_limit_bytes=vmem_limit,
        ),
        cost_estimate=cost,
    )(x, pos_table, gamma2d, beta2d)


def _reference(x, pos_table, gamma, beta):
    x32 = x.astype(jnp.float32)
    p32 = pos_table.astype(jnp.float32)
    emb = x32 + p32[None, :, :]
    mean = jnp.mean(emb, axis=-1, keepdims=True)
    var = jnp.mean((emb - mean) ** 2, axis=-1, keepdims=True)
    norm = (emb - mean) / jnp.sqrt(var + 1e-5)
    out = norm * gamma[None, None, :].astype(jnp.float32) \
        + beta[None, None, :].astype(jnp.float32)
    return out.astype(x.dtype)


if __name__ == "__main__":
    # Small shapes consistent with the module: batch=2, seq=8, embed=128
    # (E kept a multiple of 128 so the output store is lane-dense).
    B, S, E = 2, 8, 128

    key = jax.random.PRNGKey(0)
    kx, kemb = jax.random.split(key)

    x = jax.random.normal(kx, (B, S, E), dtype=jnp.float32)

    # Deterministic parameter init (matches PyTorch defaults in spirit):
    #   nn.Embedding weight ~ N(0, 1); nn.LayerNorm weight=1, bias=0.
    pos_table = jax.random.normal(kemb, (S, E), dtype=jnp.float32)
    gamma = jnp.ones((E,), dtype=jnp.float32)
    beta = jnp.zeros((E,), dtype=jnp.float32)

    out = positional_embedding_forward(x, pos_table, gamma, beta)
    out = jax.block_until_ready(out)

    ref = _reference(x, pos_table, gamma, beta)
    assert out.shape == (B, S, E)
    assert jnp.allclose(out, ref, atol=1e-5, rtol=1e-5), "mismatch vs reference"

    print("KERNEL_OK")
</pallas_src>

<mosaic_0001>
module attributes {stable_mosaic.version = 11 : i64} {
  func.func @_pos_embed_ln_kernel(%arg0: i32, %arg1: i32, %arg2: memref<2x8x128xf32, #tpu.memory_space<vmem>>, %arg3: memref<8x128xf32, #tpu.memory_space<vmem>>, %arg4: memref<1x128xf32, #tpu.memory_space<vmem>>, %arg5: memref<1x128xf32, #tpu.memory_space<vmem>>, %arg6: memref<2x8x128xf32, #tpu.memory_space<vmem>>) attributes {dimension_semantics = [#tpu.dimension_semantics<parallel>, #tpu.dimension_semantics<parallel>], iteration_bounds = array<i64: 1, 1>, scalar_prefetch = 0 : i64, scratch_operands = 0 : i64, tpu.core_type = #tpu.core_type<tc>, window_params = [{transform_indices = @transform_0, window_bounds = array<i64: 2, 8, 128>}, {transform_indices = @transform_1, window_bounds = array<i64: 8, 128>}, {pipeline_mode = #tpu.pipeline_mode<synchronous>, transform_indices = @transform_2, window_bounds = array<i64: 1, 128>}, {pipeline_mode = #tpu.pipeline_mode<synchronous>, transform_indices = @transform_3, window_bounds = array<i64: 1, 128>}, {transform_indices = @transform_4, window_bounds = array<i64: 2, 8, 128>}]} {
    %c0 = arith.constant 0 : index
    %c0_0 = arith.constant 0 : index
    %c0_1 = arith.constant 0 : index
    %0 = vector.load %arg2[%c0, %c0_0, %c0_1] : memref<2x8x128xf32, #tpu.memory_space<vmem>>, vector<2x8x128xf32>
    %c0_2 = arith.constant 0 : index
    %c0_3 = arith.constant 0 : index
    %1 = vector.load %arg3[%c0_2, %c0_3] : memref<8x128xf32, #tpu.memory_space<vmem>>, vector<8x128xf32>
    %2 = vector.shape_cast %1 : vector<8x128xf32> to vector<1x8x128xf32>
    %3 = vector.broadcast %2 : vector<1x8x128xf32> to vector<2x8x128xf32>
    %4 = arith.addf %0, %3 : vector<2x8x128xf32>
    %cst = arith.constant dense<0.000000e+00> : vector<2x8xf32>
    %5 = vector.multi_reduction <add>, %4, %cst [2] : vector<2x8x128xf32> to vector<2x8xf32>
    %6 = vector.shape_cast %5 : vector<2x8xf32> to vector<2x8x1xf32>
    %cst_4 = arith.constant 7.812500e-03 : f32
    %7 = vector.broadcast %cst_4 : f32 to vector<2x8x1xf32>
    %8 = arith.mulf %6, %7 : vector<2x8x1xf32>
    %9 = arith.mulf %4, %4 : vector<2x8x128xf32>
    %cst_5 = arith.constant dense<0.000000e+00> : vector<2x8xf32>
    %10 = vector.multi_reduction <add>, %9, %cst_5 [2] : vector<2x8x128xf32> to vector<2x8xf32>
    %11 = vector.shape_cast %10 : vector<2x8xf32> to vector<2x8x1xf32>
    %cst_6 = arith.constant 7.812500e-03 : f32
    %12 = vector.broadcast %cst_6 : f32 to vector<2x8x1xf32>
    %13 = arith.mulf %11, %12 : vector<2x8x1xf32>
    %14 = arith.mulf %8, %8 : vector<2x8x1xf32>
    %15 = arith.subf %13, %14 : vector<2x8x1xf32>
    %cst_7 = arith.constant 9.99999974E-6 : f32
    %16 = vector.broadcast %cst_7 : f32 to vector<2x8x1xf32>
    %17 = arith.addf %15, %16 : vector<2x8x1xf32>
    %18 = math.rsqrt %17 : vector<2x8x1xf32>
    %19 = vector.broadcast %8 : vector<2x8x1xf32> to vector<2x8x128xf32>
    %20 = arith.subf %4, %19 : vector<2x8x128xf32>
    %21 = vector.broadcast %18 : vector<2x8x1xf32> to vector<2x8x128xf32>
    %22 = arith.mulf %20, %21 : vector<2x8x128xf32>
    %c0_8 = arith.constant 0 : index
    %c0_9 = arith.constant 0 : index
    %23 = vector.load %arg4[%c0_8, %c0_9] : memref<1x128xf32, #tpu.memory_space<vmem>>, vector<1x128xf32>
    %24 = vector.shape_cast %23 : vector<1x128xf32> to vector<1x1x128xf32>
    %c0_10 = arith.constant 0 : index
    %c0_11 = arith.constant 0 : index
    %25 = vector.load %arg5[%c0_10, %c0_11] : memref<1x128xf32, #tpu.memory_space<vmem>>, vector<1x128xf32>
    %26 = vector.shape_cast %25 : vector<1x128xf32> to vector<1x1x128xf32>
    %27 = vector.broadcast %24 : vector<1x1x128xf32> to vector<2x8x128xf32>
    %28 = arith.mulf %22, %27 : vector<2x8x128xf32>
    %29 = vector.broadcast %26 : vector<1x1x128xf32> to vector<2x8x128xf32>
    %30 = arith.addf %28, %29 : vector<2x8x128xf32>
    %c0_12 = arith.constant 0 : index
    %c0_13 = arith.constant 0 : index
    %c0_14 = arith.constant 0 : index
    %31 = vector.load %arg6[%c0_12, %c0_13, %c0_14] : memref<2x8x128xf32, #tpu.memory_space<vmem>>, vector<2x8x128xf32>
    tpu.vector_store %arg6[%c0_12, %c0_13, %c0_14], %30 {strides = array<i32>} : memref<2x8x128xf32, #tpu.memory_space<vmem>>, vector<2x8x128xf32>,
    return
  }
  func.func @transform_0(%arg0: i32, %arg1: i32) -> (i32, i32, i32) {
    %c0_i32 = arith.constant 0 : i32
    %c0_i32_0 = arith.constant 0 : i32
    return %arg1, %arg0, %c0_i32 : i32, i32, i32
  }
  func.func @transform_1(%arg0: i32, %arg1: i32) -> (i32, i32) {
    %c0_i32 = arith.constant 0 : i32
    %c0_i32_0 = arith.constant 0 : i32
    return %arg0, %c0_i32 : i32, i32
  }
  func.func @transform_2(%arg0: i32, %arg1: i32) -> (i32, i32) {
    %c0_i32 = arith.constant 0 : i32
    %c0_i32_0 = arith.constant 0 : i32
    %c0_i32_1 = arith.constant 0 : i32
    return %c0_i32, %c0_i32_0 : i32, i32
  }
  func.func @transform_3(%arg0: i32, %arg1: i32) -> (i32, i32) {
    %c0_i32 = arith.constant 0 : i32
    %c0_i32_0 = arith.constant 0 : i32
    %c0_i32_1 = arith.constant 0 : i32
    return %c0_i32, %c0_i32_0 : i32, i32
  }
  func.func @transform_4(%arg0: i32, %arg1: i32) -> (i32, i32, i32) {
    %c0_i32 = arith.constant 0 : i32
    %c0_i32_0 = arith.constant 0 : i32
    return %arg1, %arg0, %c0_i32 : i32, i32, i32
  }
}

</mosaic_0001>

<bundles_post_ra>
// kernel: tpu_custom_call.1
= control target key start
LH: loop header
LB: loop body
LE: loop exit
PB: predicated region body
PF: predicated region fallthrough
CT: control target
= control target key end

     0   :  { %9 = vsyncpa [#allocation3], 0  ;;  %s274_s0 = inlined_call_operand.hbm [shape: f32[2,8,128], index: 0, kind: input, shape index: {}]   ;;  %s275_s1 = inlined_call_operand.hbm [shape: f32[8,128], index: 1, kind: input, shape index: {}]   ;;  %s276_s2 = inlined_call_operand.vmem [shape: f32[1,128], index: 2, kind: input, shape index: {}]   ;;  %s277_s3 = inlined_call_operand.vmem [shape: f32[1,128], index: 3, kind: input, shape index: {}]   ;;  %s278_s4 = inlined_call_operand.hbm [shape: f32[2,8,128], index: 4, kind: output, shape index: {}]  }
   0x1   :  { %10 = vsyncpa [#allocation6], 0 }
   0x2   :  { %11 = vsyncpa [#allocation4], 0  ;;  %s196_s15 = smov [#allocation2]   ;;  %s124_s19 = scalar_lea.hbm %s274_s0, 256 }
   0x3   :  { %s17_s16 = sshll.u32 %s196_s15, 4  ;;  %p125_p0 = scmp.ne.s32.totalorder %s274_s0, %s124_s19  ;;  %s18_s16 = int_to_ptr.vmem [resolvable:$true] %s17_s16 }
   0x4   :  { %p128_p1 = scmp.lt.u32.totalorder %s124_s19, %s274_s0 }
   0x6   :  { %p130_p2 = pnand %p128_p1, %p125_p0 }
   0x8   :  { %133 = shalt.err (!%p130_p2)
}
   0x9   :  { %s134_s24 = scalar_lea.vmem %s18_s16, 256  ;;  %p139_p4 = scmp.lt.s32.totalorder %s18_s16, %s18_s16 }
   0xa   :  { %p135_p3 = scmp.ne.s32.totalorder %s18_s16, %s134_s24  ;;  %p140_p5 = scmp.lt.s32.totalorder %s134_s24, %s134_s24 }
   0xc   :  { %p141_p6 = por %p140_p5, %p139_p4 }
   0xe   :  { %p142_p7 = pnand %p141_p6, %p135_p3 }
  0x10   :  { %145 = shalt.err (!%p142_p7)
}
  0x11   :  { %s197_s25 = smov 128   ;;  %s198_s26 = smov 8  }
  0x12   :  { %23 = dma.hbm_to_vmem [thread:$0]  %s274_s0, 256, %s18_s16, [#allocation3], %s197_s25, %s197_s25, %s198_s26  }
  0x13   :  { %s199_s29 = smov [#allocation5]   ;;  %s146_s7 = scalar_lea.hbm %s275_s1, 128 }
  0x14   :  { %s30_s30 = sshll.u32 %s199_s29, 4  ;;  %p147_p8 = scmp.ne.s32.totalorder %s275_s1, %s146_s7  ;;  %s31_s30 = int_to_ptr.vmem [resolvable:$true] %s30_s30 }
  0x15   :  { %p150_p9 = scmp.lt.u32.totalorder %s146_s7, %s275_s1 }
  0x17   :  { %p152_p10 = pnand %p150_p9, %p147_p8 }
  0x19   :  { %155 = shalt.err (!%p152_p10)
}
  0x1a   :  { %s156_s12 = scalar_lea.vmem %s31_s30, 128  ;;  %p161_p12 = scmp.lt.s32.totalorder %s31_s30, %s31_s30 }
  0x1b   :  { %p157_p11 = scmp.ne.s32.totalorder %s31_s30, %s156_s12  ;;  %p162_p13 = scmp.lt.s32.totalorder %s156_s12, %s156_s12 }
  0x1d   :  { %p163_p0 = por %p162_p13, %p161_p12 }
  0x1f   :  { %p164_p1 = pnand %p163_p0, %p157_p11 }
  0x21   :  { %167 = shalt.err (!%p164_p1)
}
  0x22   :  { %33 = dma.hbm_to_vmem [thread:$0]  %s275_s1, 128, %s31_s30, [#allocation6]  }
  0x23   :  { %190 = dma.done.wait [#allocation3], 256  }
  0x24   :  { %191 = vsyncadd [#allocation3], 4294967040 }
  0x25   :  { %192 = dma.done.wait [#allocation6], 128  }
  0x26   :  { %193 = vsyncadd [#allocation6], 4294967168  ;;  %v44_v0 = vld [vmem:[#allocation2] sm:$0xff]  ;;  %v46_v1 = vld [vmem:[#allocation5] sm:$0xff]  ;;  %s200_s17 = smov [#allocation7]  }
  0x27   :  { %v45_v2 = vld [vmem:[#allocation2 + $0x8] sm:$0xff]  ;;  %v47_v3 = vadd.f32 %v46_v1, %v44_v0  ;;  %v113_v23 = vld [vmem:[%s276_s2] ss:$0 sm:$0xff]  ;;  %s100_s18 = sshll.u32 %s200_s17, 4  ;;  %s101_s18 = int_to_ptr.vmem [resolvable:$true] %s100_s18 }
  0x28   :  { %v48_v4 = vadd.f32 %v46_v1, %v45_v2  ;;  %v114_v25 = vld [vmem:[%s277_s3] ss:$0 sm:$0xff]  ;;  %s168_s19 = scalar_lea.vmem %s101_s18, 256  ;;  %p173_p3 = scmp.lt.s32.totalorder %s101_s18, %s101_s18 }
  0x29   :  { %49 = vadd.xlane.f32.xlu0 %v47_v3  ;;  %v55_v5 = vmul.f32 %v47_v3, %v47_v3  ;;  %p169_p2 = scmp.ne.s32.totalorder %s101_s18, %s168_s19  ;;  %p174_p4 = scmp.lt.s32.totalorder %s168_s19, %s168_s19 }
  0x2a   :  { %v56_v6 = vmul.f32 %v48_v4, %v48_v4 }
  0x2b   :  { %57 = vadd.xlane.f32.xlu1 %v55_v5  ;;  %p175_p5 = por %p174_p4, %p173_p3 }
  0x2d   :  { %51 = vadd.xlane.f32.xlu0 %v48_v4  ;;  %p176_p6 = pnand %p175_p5, %p169_p2 }
  0x2f   :  { %59 = vadd.xlane.f32.xlu1 %v56_v6 }
  0xb6   :  { %v50_v7 = vpop.xlane.xlu0 %49 }
  0xb7   :  { %v53_v8 = vmul.f32 0.0078125, %v50_v7 }
  0xb8   :  { %v58_v9 = vpop.xlane.xlu1 %57 }
  0xb9   :  { %v63_v10 = vmul.f32 %v53_v8, %v53_v8  ;;  %v61_v11 = vmul.f32 0.0078125, %v58_v9  ;;  %v71_v21 = vsub.f32 %v47_v3, %v53_v8 }
  0xba   :  { %v52_v12 = vpop.xlane.xlu0 %51 }
  0xbb   :  { %v65_v13 = vsub.f32 %v61_v11, %v63_v10  ;;  %v54_v14 = vmul.f32 0.0078125, %v52_v12 }
  0xbc   :  { %v60_v15 = vpop.xlane.xlu1 %59 }
  0xbd   :  { %v67_v16 = vadd.f32 1e-05, %v65_v13  ;;  %v64_v17 = vmul.f32 %v54_v14, %v54_v14  ;;  %v62_v18 = vmul.f32 0.0078125, %v60_v15  ;;  %v72_v26 = vsub.f32 %v48_v4, %v54_v14 }
  0xbf   :  { %120 = vrsqrt.f32 %v67_v16  ;;  %v66_v19 = vsub.f32 %v62_v18, %v64_v17 }
  0xc1   :  { %v68_v20 = vadd.f32 1e-05, %v66_v19 }
  0xc3   :  { %122 = vrsqrt.f32 %v68_v20 }
  0xc9   :  { %v121_v22 = vpop.eup %120 }
  0xca   :  { %v73_v24 = vmul.f32 %v121_v22, %v71_v21 }
  0xcc   :  { %v83_v27 = vmul.f32 %v113_v23, %v73_v24 }
  0xcd   :  { %v123_v28 = vpop.eup %122 }
  0xce   :  { %v74_v29 = vmul.f32 %v123_v28, %v72_v26  ;;  %v91_v30 = vadd.f32 %v114_v25, %v83_v27 }
  0xd0   :  { %v84_v31 = vmul.f32 %v113_v23, %v74_v29  ;;  %93 = vst [vmem:[#allocation7] sm:$0xff] %v91_v30 }
  0xd2   :  { %v92_v32 = vadd.f32 %v114_v25, %v84_v31 }
  0xd4   :  { %94 = vst [vmem:[#allocation7 + $0x8] sm:$0xff] %v92_v32 }
  0xd5   :  { %179 = shalt.err (!%p176_p6)
}
  0xd6   :  { %s180_s20 = scalar_lea.hbm %s278_s4, 256 }
  0xd7   :  { %p181_p7 = scmp.ne.s32.totalorder %s278_s4, %s180_s20  ;;  %p184_p8 = scmp.lt.u32.totalorder %s180_s20, %s278_s4 }
  0xd9   :  { %p186_p9 = pnand %p184_p8, %p181_p7 }
  0xdb   :  { %189 = shalt.err (!%p186_p9)
}
  0xdc   :  { %106 = dma.vmem_to_hbm [thread:$0]  %s101_s18, 256, %s278_s4, [#allocation4], %s197_s25, %s197_s25, %s198_s26  }
  0xdd   :  { %194 = dma.done.wait [#allocation4], 256  }
  0xde   :  { %195 = vsyncadd [#allocation4], 4294967040 }
  0xdf   :  { %110 = vsyncpa [#allocation3], 1 }
  0xe0   :  { %111 = vsyncpa [#allocation6], 1 }
  0xe1   :  { %112 = vsyncpa [#allocation4], 1 }

</bundles_post_ra>
